<compile_context>
chip_gen: v7x
topology: tpu7x:2x2x1
jax: 0.10.0
libtpu: 0.0.40
codegen_flags: <defaults>
</compile_context>

<pallas_src>
import functools
import jax
import jax.numpy as jnp
from jax.experimental import pallas as pl
from jax.experimental.pallas import tpu as pltpu

EPS = 1e-5
LANE = 128
SUBLANE = 8


# --------------------------------------------------------------------------
# Kernel
# --------------------------------------------------------------------------
def _forward_kernel(layout, n_hidden, batch, x_ref, p_ref, slope_ref, out_ref):
    """Whole forward pass on fully-resident VMEM tiles; every parameter is a
    full-lane-width static slice of one packed array (single DMA)."""

    def vec(name):                        # (1, 128) row vector (zero-padded)
        off = layout[name]
        return p_ref[off:off + 1, :]

    def mat(name):                        # (128, 128) weight, pre-transposed
        off = layout[name]                # (in, out), zero-padded rows/cols
        return p_ref[off:off + LANE, :]

    ones_row = jnp.ones((1, batch), jnp.float32)
    inv_b = jnp.float32(1.0 / batch)

    def bn(x, gamma, beta):
        # Both batch moments in one small MXU matmul (no XLU axis=0 reductions):
        #   (1,B) @ (B, 2*128) -> [sum(d), sum(d*d)].
        # d = x - x[0] (shift by first sample) guards E[d^2]-E[d]^2 against
        # catastrophic cancellation when inputs are far from zero mean.
        shift = x[0:1, :]
        d = x - shift
        moments = jnp.dot(ones_row,
                          jnp.concatenate([d, d * d], axis=-1),
                          preferred_element_type=jnp.float32) * inv_b
        m_d = moments[:, :LANE]
        var = jnp.maximum(moments[:, LANE:] - m_d * m_d, 0.0)
        # Folded affine: one full-tile mul + one add; scale/bias math stays
        # on tiny (1,128) rows. gamma=0 in padded lanes keeps them at 0.
        scale = gamma * jax.lax.rsqrt(var + EPS)
        bias = beta - (m_d + shift) * scale
        return x * scale + bias

    x = x_ref[...].astype(jnp.float32)

    # bn_in
    x = bn(x, vec("bn_in_g"), vec("bn_in_b"))

    # fc_0 -> bn_0 -> sigmoid  (fc_0 bias cancels inside training-mode bn_0)
    x = jnp.dot(x, mat("w0"), preferred_element_type=jnp.float32)
    x = bn(x, vec("bn0_g"), vec("bn0_b"))
    x = jax.nn.sigmoid(x)

    # hidden fc_1 .. fc_{n-1}, each followed by sigmoid (bias kept)
    for i in range(1, n_hidden):
        x = jnp.dot(x, mat(f"w{i}"), preferred_element_type=jnp.float32) + vec(f"b{i}")
        x = jax.nn.sigmoid(x)

    # fc_out -> bn_out -> prelu  (fc_out bias cancels inside training-mode bn_out)
    x = jnp.dot(x, mat("w_out"), preferred_element_type=jnp.float32)
    x = bn(x, vec("bn_out_g"), vec("bn_out_b"))
    a = slope_ref[0, 0]                   # PReLU shared slope (SMEM scalar)
    out_ref[...] = jnp.where(x >= 0, x, a * x).astype(out_ref.dtype)


# --------------------------------------------------------------------------
# Host-side packing
# --------------------------------------------------------------------------
def pack_params(raw, input_size, hidden_sizes, output_size):
    """Pack all kernel-side parameters into one (R, 128) f32 array:
    weights as zero-padded (128,128) blocks, vectors as row 0 of an (8,128)
    block.  All offsets are sublane (8)-aligned and every in-kernel read is
    full lane width.  Returns (packed, slope, layout)."""
    dims = [input_size] + list(hidden_sizes) + [output_size]
    assert max(dims) <= LANE, "pack_params assumes all layer widths <= 128"

    n_hidden = len(hidden_sizes)
    entries = []

    def add_vec(name, v):                 # v: (1, c)
        a = jnp.zeros((SUBLANE, LANE), jnp.float32)
        a = a.at[0, : v.shape[1]].set(v[0].astype(jnp.float32))
        entries.append((name, a))

    def add_mat(name, w):                 # w: (r, c) already (in, out)
        a = jnp.zeros((LANE, LANE), jnp.float32)
        a = a.at[: w.shape[0], : w.shape[1]].set(w.astype(jnp.float32))
        entries.append((name, a))

    add_vec("bn_in_g", raw["bn_in_g"])
    add_vec("bn_in_b", raw["bn_in_b"])
    add_mat("w0", raw["w0"])              # fc_0 bias dropped (cancels in bn_0)
    add_vec("bn0_g", raw["bn0_g"])
    add_vec("bn0_b", raw["bn0_b"])
    for i in range(1, n_hidden):
        add_mat(f"w{i}", raw[f"w{i}"])
        add_vec(f"b{i}", raw[f"b{i}"])
    add_mat("w_out", raw["w_out"])        # fc_out bias dropped (cancels in bn_out)
    add_vec("bn_out_g", raw["bn_out_g"])
    add_vec("bn_out_b", raw["bn_out_b"])

    layout = {}
    off = 0
    blocks = []
    for name, a in entries:
        layout[name] = off
        off += a.shape[0]
        blocks.append(a)
    packed = jnp.concatenate(blocks, axis=0)
    slope = jnp.asarray(raw["prelu_a"], jnp.float32).reshape(1, 1)
    return packed, slope, layout


# --------------------------------------------------------------------------
# Wrapper
# --------------------------------------------------------------------------
def partial_derive_net_forward(x, packed, slope, layout,
                               input_size, hidden_sizes, output_size):
    """Grid-less pallas_call: activations + packed params are tiny, so the
    whole net runs on full-array VMEM blocks in one invocation.  Input is
    zero-padded to 128 lanes host-side; output is written lane-dense and
    sliced here."""
    batch = x.shape[0]
    x_p = jnp.zeros((batch, LANE), jnp.float32)
    x_p = x_p.at[:, :input_size].set(x.astype(jnp.float32))

    dims = [input_size] + list(hidden_sizes) + [output_size]
    mm_flops = 2 * batch * sum(a * b for a, b in zip(dims[:-1], dims[1:]))
    bn_flops = 4 * batch * (input_size + hidden_sizes[0] + output_size)
    cost = pl.CostEstimate(
        flops=mm_flops + bn_flops,
        transcendentals=batch * sum(hidden_sizes),
        bytes_accessed=4 * (x_p.size + packed.size + batch * LANE) + 4,
    )

    kernel = functools.partial(_forward_kernel, layout, len(hidden_sizes), batch)
    out = pl.pallas_call(
        kernel,
        out_shape=jax.ShapeDtypeStruct((batch, LANE), jnp.float32),
        in_specs=[
            pl.BlockSpec(memory_space=pltpu.MemorySpace.VMEM),   # x (padded)
            pl.BlockSpec(memory_space=pltpu.MemorySpace.VMEM),   # packed params
            pl.BlockSpec(memory_space=pltpu.MemorySpace.SMEM),   # prelu slope
        ],
        out_specs=pl.BlockSpec(memory_space=pltpu.MemorySpace.VMEM),
        cost_estimate=cost,
    )(x_p, packed, slope)
    return out[:, :output_size]


# --------------------------------------------------------------------------
# Parameter init (matches the PyTorch module) + pure-JAX reference
# --------------------------------------------------------------------------
def init_params(key, input_size, hidden_sizes, output_size):
    """Matches the PyTorch module __init__: Linear weights/biases ~ N(0,1),
    BatchNorm gamma=1 / beta=0, PReLU slope 0.25. Weights stored pre-transposed
    to (in, out); 1-D vectors stored as (1, F)."""
    raw = {}
    n_hidden = len(hidden_sizes)
    keys = jax.random.split(key, 2 * (n_hidden + 1))
    ki = 0

    def lin(in_f, out_f):
        nonlocal ki
        w = jax.random.normal(keys[ki], (out_f, in_f), jnp.float32)  # torch (out,in)
        ki += 1
        b = jax.random.normal(keys[ki], (out_f,), jnp.float32)
        ki += 1
        return w.T, b[None, :]

    raw["bn_in_g"] = jnp.ones((1, input_size), jnp.float32)
    raw["bn_in_b"] = jnp.zeros((1, input_size), jnp.float32)
    raw["w0"], raw["b0"] = lin(input_size, hidden_sizes[0])
    raw["bn0_g"] = jnp.ones((1, hidden_sizes[0]), jnp.float32)
    raw["bn0_b"] = jnp.zeros((1, hidden_sizes[0]), jnp.float32)
    for i in range(1, n_hidden):
        raw[f"w{i}"], raw[f"b{i}"] = lin(hidden_sizes[i - 1], hidden_sizes[i])
    raw["w_out"], raw["b_out"] = lin(hidden_sizes[-1], output_size)
    raw["bn_out_g"] = jnp.ones((1, output_size), jnp.float32)
    raw["bn_out_b"] = jnp.zeros((1, output_size), jnp.float32)
    raw["prelu_a"] = jnp.float32(0.25)
    return raw


def reference_forward(x, raw, hidden_sizes):
    """Pure-JAX reference with exact PyTorch semantics (biases included,
    two-pass batch variance)."""
    def bn(x, g, b):
        mean = jnp.mean(x, axis=0, keepdims=True)
        var = jnp.mean((x - mean) ** 2, axis=0, keepdims=True)
        return g * (x - mean) / jnp.sqrt(var + EPS) + b

    x = bn(x, raw["bn_in_g"], raw["bn_in_b"])
    x = x @ raw["w0"] + raw["b0"]
    x = bn(x, raw["bn0_g"], raw["bn0_b"])
    x = jax.nn.sigmoid(x)
    for i in range(1, len(hidden_sizes)):
        x = x @ raw[f"w{i}"] + raw[f"b{i}"]
        x = jax.nn.sigmoid(x)
    x = x @ raw["w_out"] + raw["b_out"]
    x = bn(x, raw["bn_out_g"], raw["bn_out_b"])
    a = raw["prelu_a"]
    return jnp.where(x >= 0, x, a * x)


if __name__ == "__main__":
    input_size = 8
    hidden_sizes = [32, 16]
    output_size = 4
    batch = 16

    key = jax.random.PRNGKey(0)
    k_x, k_p = jax.random.split(key)
    x = jax.random.normal(k_x, (batch, input_size), jnp.float32)
    raw = init_params(k_p, input_size, hidden_sizes, output_size)
    packed, slope, layout = pack_params(raw, input_size, hidden_sizes, output_size)

    out = partial_derive_net_forward(x, packed, slope, layout,
                                     input_size, hidden_sizes, output_size)
    out = jax.block_until_ready(out)

    ref = reference_forward(x, raw, hidden_sizes)
    assert out.shape == (batch, output_size)
    assert jnp.allclose(out, ref, rtol=1e-4, atol=1e-4), "mismatch vs JAX reference"

    print("KERNEL_OK")
</pallas_src>

<mosaic_0001>
module attributes {stable_mosaic.version = 11 : i64} {
  func.func @_forward_kernel(%arg0: memref<16x128xf32, #tpu.memory_space<vmem>>, %arg1: memref<440x128xf32, #tpu.memory_space<vmem>>, %arg2: memref<1x1xf32, #tpu.memory_space<smem>>, %arg3: memref<16x128xf32, #tpu.memory_space<vmem>>) attributes {dimension_semantics = [], scalar_prefetch = 0 : i64, scratch_operands = 0 : i64, tpu.core_type = #tpu.core_type<tc>} {
    %cst = arith.constant 1.000000e+00 : f32
    %0 = vector.broadcast %cst : f32 to vector<1x16xf32>
    %c0 = arith.constant 0 : index
    %c0_0 = arith.constant 0 : index
    %1 = vector.load %arg0[%c0, %c0_0] : memref<16x128xf32, #tpu.memory_space<vmem>>, vector<16x128xf32>
    %c0_1 = arith.constant 0 : index
    %c0_2 = arith.constant 0 : index
    %2 = vector.load %arg1[%c0_1, %c0_2] : memref<440x128xf32, #tpu.memory_space<vmem>>, vector<1x128xf32>
    %c8 = arith.constant 8 : index
    %c0_3 = arith.constant 0 : index
    %3 = vector.load %arg1[%c8, %c0_3] : memref<440x128xf32, #tpu.memory_space<vmem>>, vector<1x128xf32>
    %4 = vector.extract_strided_slice %1 {offsets = [0, 0], sizes = [1, 128], strides = [1, 1]} : vector<16x128xf32> to vector<1x128xf32>
    %5 = vector.broadcast %4 : vector<1x128xf32> to vector<16x128xf32>
    %6 = arith.subf %1, %5 : vector<16x128xf32>
    %7 = arith.mulf %6, %6 : vector<16x128xf32>
    %8 = tpu.concatenate %6, %7 in 1 : vector<16x128xf32>, vector<16x128xf32> -> vector<16x256xf32>
    %cst_4 = arith.constant dense<0.000000e+00> : vector<1x256xf32>
    %9 = tpu.matmul %0, %8, %cst_4 {dimension_numbers = #tpu.dot_dimension_numbers<[1], [0], [0], [1], [0, 0, 1, 1], [], []>} : vector<1x16xf32>, vector<16x256xf32>, vector<1x256xf32> -> vector<1x256xf32>
    %cst_5 = arith.constant 6.250000e-02 : f32
    %10 = vector.broadcast %cst_5 : f32 to vector<1x256xf32>
    %11 = arith.mulf %9, %10 : vector<1x256xf32>
    %12 = vector.extract_strided_slice %11 {offsets = [0, 0], sizes = [1, 128], strides = [1, 1]} : vector<1x256xf32> to vector<1x128xf32>
    %13 = vector.extract_strided_slice %11 {offsets = [0, 128], sizes = [1, 128], strides = [1, 1]} : vector<1x256xf32> to vector<1x128xf32>
    %14 = arith.mulf %12, %12 : vector<1x128xf32>
    %15 = arith.subf %13, %14 : vector<1x128xf32>
    %cst_6 = arith.constant 0.000000e+00 : f32
    %16 = vector.broadcast %cst_6 : f32 to vector<1x128xf32>
    %17 = arith.maximumf %15, %16 : vector<1x128xf32>
    %cst_7 = arith.constant 9.99999974E-6 : f32
    %18 = vector.broadcast %cst_7 : f32 to vector<1x128xf32>
    %19 = arith.addf %17, %18 : vector<1x128xf32>
    %20 = math.rsqrt %19 : vector<1x128xf32>
    %21 = arith.mulf %2, %20 : vector<1x128xf32>
    %22 = arith.addf %12, %4 : vector<1x128xf32>
    %23 = arith.mulf %22, %21 : vector<1x128xf32>
    %24 = arith.subf %3, %23 : vector<1x128xf32>
    %25 = vector.broadcast %21 : vector<1x128xf32> to vector<16x128xf32>
    %26 = arith.mulf %1, %25 : vector<16x128xf32>
    %27 = vector.broadcast %24 : vector<1x128xf32> to vector<16x128xf32>
    %28 = arith.addf %26, %27 : vector<16x128xf32>
    %c16 = arith.constant 16 : index
    %c0_8 = arith.constant 0 : index
    %29 = vector.load %arg1[%c16, %c0_8] : memref<440x128xf32, #tpu.memory_space<vmem>>, vector<128x128xf32>
    %cst_9 = arith.constant dense<0.000000e+00> : vector<16x128xf32>
    %30 = tpu.matmul %28, %29, %cst_9 {dimension_numbers = #tpu.dot_dimension_numbers<[1], [0], [0], [1], [0, 0, 1, 1], [], []>} : vector<16x128xf32>, vector<128x128xf32>, vector<16x128xf32> -> vector<16x128xf32>
    %c144 = arith.constant 144 : index
    %c0_10 = arith.constant 0 : index
    %31 = vector.load %arg1[%c144, %c0_10] : memref<440x128xf32, #tpu.memory_space<vmem>>, vector<1x128xf32>
    %c152 = arith.constant 152 : index
    %c0_11 = arith.constant 0 : index
    %32 = vector.load %arg1[%c152, %c0_11] : memref<440x128xf32, #tpu.memory_space<vmem>>, vector<1x128xf32>
    %33 = vector.extract_strided_slice %30 {offsets = [0, 0], sizes = [1, 128], strides = [1, 1]} : vector<16x128xf32> to vector<1x128xf32>
    %34 = vector.broadcast %33 : vector<1x128xf32> to vector<16x128xf32>
    %35 = arith.subf %30, %34 : vector<16x128xf32>
    %36 = arith.mulf %35, %35 : vector<16x128xf32>
    %37 = tpu.concatenate %35, %36 in 1 : vector<16x128xf32>, vector<16x128xf32> -> vector<16x256xf32>
    %cst_12 = arith.constant dense<0.000000e+00> : vector<1x256xf32>
    %38 = tpu.matmul %0, %37, %cst_12 {dimension_numbers = #tpu.dot_dimension_numbers<[1], [0], [0], [1], [0, 0, 1, 1], [], []>} : vector<1x16xf32>, vector<16x256xf32>, vector<1x256xf32> -> vector<1x256xf32>
    %cst_13 = arith.constant 6.250000e-02 : f32
    %39 = vector.broadcast %cst_13 : f32 to vector<1x256xf32>
    %40 = arith.mulf %38, %39 : vector<1x256xf32>
    %41 = vector.extract_strided_slice %40 {offsets = [0, 0], sizes = [1, 128], strides = [1, 1]} : vector<1x256xf32> to vector<1x128xf32>
    %42 = vector.extract_strided_slice %40 {offsets = [0, 128], sizes = [1, 128], strides = [1, 1]} : vector<1x256xf32> to vector<1x128xf32>
    %43 = arith.mulf %41, %41 : vector<1x128xf32>
    %44 = arith.subf %42, %43 : vector<1x128xf32>
    %cst_14 = arith.constant 0.000000e+00 : f32
    %45 = vector.broadcast %cst_14 : f32 to vector<1x128xf32>
    %46 = arith.maximumf %44, %45 : vector<1x128xf32>
    %cst_15 = arith.constant 9.99999974E-6 : f32
    %47 = vector.broadcast %cst_15 : f32 to vector<1x128xf32>
    %48 = arith.addf %46, %47 : vector<1x128xf32>
    %49 = math.rsqrt %48 : vector<1x128xf32>
    %50 = arith.mulf %31, %49 : vector<1x128xf32>
    %51 = arith.addf %41, %33 : vector<1x128xf32>
    %52 = arith.mulf %51, %50 : vector<1x128xf32>
    %53 = arith.subf %32, %52 : vector<1x128xf32>
    %54 = vector.broadcast %50 : vector<1x128xf32> to vector<16x128xf32>
    %55 = arith.mulf %30, %54 : vector<16x128xf32>
    %56 = vector.broadcast %53 : vector<1x128xf32> to vector<16x128xf32>
    %57 = arith.addf %55, %56 : vector<16x128xf32>
    %58 = arith.negf %57 : vector<16x128xf32>
    %59 = math.exp %58 : vector<16x128xf32>
    %cst_16 = arith.constant 1.000000e+00 : f32
    %60 = vector.broadcast %cst_16 : f32 to vector<16x128xf32>
    %61 = arith.addf %60, %59 : vector<16x128xf32>
    %62 = arith.divf %60, %61 : vector<16x128xf32>
    %c160 = arith.constant 160 : index
    %c0_17 = arith.constant 0 : index
    %63 = vector.load %arg1[%c160, %c0_17] : memref<440x128xf32, #tpu.memory_space<vmem>>, vector<128x128xf32>
    %cst_18 = arith.constant dense<0.000000e+00> : vector<16x128xf32>
    %64 = tpu.matmul %62, %63, %cst_18 {dimension_numbers = #tpu.dot_dimension_numbers<[1], [0], [0], [1], [0, 0, 1, 1], [], []>} : vector<16x128xf32>, vector<128x128xf32>, vector<16x128xf32> -> vector<16x128xf32>
    %c288 = arith.constant 288 : index
    %c0_19 = arith.constant 0 : index
    %65 = vector.load %arg1[%c288, %c0_19] : memref<440x128xf32, #tpu.memory_space<vmem>>, vector<1x128xf32>
    %66 = vector.broadcast %65 : vector<1x128xf32> to vector<16x128xf32>
    %67 = arith.addf %64, %66 : vector<16x128xf32>
    %68 = arith.negf %67 : vector<16x128xf32>
    %69 = math.exp %68 : vector<16x128xf32>
    %cst_20 = arith.constant 1.000000e+00 : f32
    %70 = vector.broadcast %cst_20 : f32 to vector<16x128xf32>
    %71 = arith.addf %70, %69 : vector<16x128xf32>
    %72 = arith.divf %70, %71 : vector<16x128xf32>
    %c296 = arith.constant 296 : index
    %c0_21 = arith.constant 0 : index
    %73 = vector.load %arg1[%c296, %c0_21] : memref<440x128xf32, #tpu.memory_space<vmem>>, vector<128x128xf32>
    %cst_22 = arith.constant dense<0.000000e+00> : vector<16x128xf32>
    %74 = tpu.matmul %72, %73, %cst_22 {dimension_numbers = #tpu.dot_dimension_numbers<[1], [0], [0], [1], [0, 0, 1, 1], [], []>} : vector<16x128xf32>, vector<128x128xf32>, vector<16x128xf32> -> vector<16x128xf32>
    %c424 = arith.constant 424 : index
    %c0_23 = arith.constant 0 : index
    %75 = vector.load %arg1[%c424, %c0_23] : memref<440x128xf32, #tpu.memory_space<vmem>>, vector<1x128xf32>
    %c432 = arith.constant 432 : index
    %c0_24 = arith.constant 0 : index
    %76 = vector.load %arg1[%c432, %c0_24] : memref<440x128xf32, #tpu.memory_space<vmem>>, vector<1x128xf32>
    %77 = vector.extract_strided_slice %74 {offsets = [0, 0], sizes = [1, 128], strides = [1, 1]} : vector<16x128xf32> to vector<1x128xf32>
    %78 = vector.broadcast %77 : vector<1x128xf32> to vector<16x128xf32>
    %79 = arith.subf %74, %78 : vector<16x128xf32>
    %80 = arith.mulf %79, %79 : vector<16x128xf32>
    %81 = tpu.concatenate %79, %80 in 1 : vector<16x128xf32>, vector<16x128xf32> -> vector<16x256xf32>
    %cst_25 = arith.constant dense<0.000000e+00> : vector<1x256xf32>
    %82 = tpu.matmul %0, %81, %cst_25 {dimension_numbers = #tpu.dot_dimension_numbers<[1], [0], [0], [1], [0, 0, 1, 1], [], []>} : vector<1x16xf32>, vector<16x256xf32>, vector<1x256xf32> -> vector<1x256xf32>
    %cst_26 = arith.constant 6.250000e-02 : f32
    %83 = vector.broadcast %cst_26 : f32 to vector<1x256xf32>
    %84 = arith.mulf %82, %83 : vector<1x256xf32>
    %85 = vector.extract_strided_slice %84 {offsets = [0, 0], sizes = [1, 128], strides = [1, 1]} : vector<1x256xf32> to vector<1x128xf32>
    %86 = vector.extract_strided_slice %84 {offsets = [0, 128], sizes = [1, 128], strides = [1, 1]} : vector<1x256xf32> to vector<1x128xf32>
    %87 = arith.mulf %85, %85 : vector<1x128xf32>
    %88 = arith.subf %86, %87 : vector<1x128xf32>
    %cst_27 = arith.constant 0.000000e+00 : f32
    %89 = vector.broadcast %cst_27 : f32 to vector<1x128xf32>
    %90 = arith.maximumf %88, %89 : vector<1x128xf32>
    %cst_28 = arith.constant 9.99999974E-6 : f32
    %91 = vector.broadcast %cst_28 : f32 to vector<1x128xf32>
    %92 = arith.addf %90, %91 : vector<1x128xf32>
    %93 = math.rsqrt %92 : vector<1x128xf32>
    %94 = arith.mulf %75, %93 : vector<1x128xf32>
    %95 = arith.addf %85, %77 : vector<1x128xf32>
    %96 = arith.mulf %95, %94 : vector<1x128xf32>
    %97 = arith.subf %76, %96 : vector<1x128xf32>
    %98 = vector.broadcast %94 : vector<1x128xf32> to vector<16x128xf32>
    %99 = arith.mulf %74, %98 : vector<16x128xf32>
    %100 = vector.broadcast %97 : vector<1x128xf32> to vector<16x128xf32>
    %101 = arith.addf %99, %100 : vector<16x128xf32>
    %c0_29 = arith.constant 0 : index
    %c0_30 = arith.constant 0 : index
    %102 = memref.load %arg2[%c0_29, %c0_30] : memref<1x1xf32, #tpu.memory_space<smem>>
    %cst_31 = arith.constant 0.000000e+00 : f32
    %103 = vector.broadcast %cst_31 : f32 to vector<16x128xf32>
    %104 = arith.cmpf oge, %101, %103 : vector<16x128xf32>
    %105 = vector.broadcast %102 : f32 to vector<16x128xf32>
    %106 = arith.mulf %105, %101 : vector<16x128xf32>
    %107 = arith.select %104, %101, %106 : vector<16x128xi1>, vector<16x128xf32>
    %c0_32 = arith.constant 0 : index
    %c0_33 = arith.constant 0 : index
    %108 = vector.load %arg3[%c0_32, %c0_33] : memref<16x128xf32, #tpu.memory_space<vmem>>, vector<16x128xf32>
    tpu.vector_store %arg3[%c0_32, %c0_33], %107 {strides = array<i32>} : memref<16x128xf32, #tpu.memory_space<vmem>>, vector<16x128xf32>,
    return
  }
}

</mosaic_0001>

<bundles_post_ra>
// kernel: tpu_custom_call.1
= control target key start
LH: loop header
LB: loop body
LE: loop exit
PB: predicated region body
PF: predicated region fallthrough
CT: control target
= control target key end

     0   :  { %9 = vsyncpa [#allocation4], 0  ;;  %s1183_s0 = inlined_call_operand.hbm [shape: f32[16,128], index: 0, kind: input, shape index: {}]   ;;  %s1184_s1 = inlined_call_operand.hbm [shape: f32[440,128], index: 1, kind: input, shape index: {}]   ;;  %s1185_s2 = inlined_call_operand.<no memory space> [shape: f32[1,1], index: 2, kind: input, shape index: {}]   ;;  %s1186_s3 = inlined_call_operand.hbm [shape: f32[16,128], index: 3, kind: output, shape index: {}]  }
   0x1   :  { %10 = vsyncpa [#allocation7], 0 }
   0x2   :  { %11 = vsyncpa [#allocation5], 0  ;;  %s1068_s12 = smov [#allocation3]   ;;  %s996_s16 = scalar_lea.hbm %s1183_s0, 256 }
   0x3   :  { %s17_s13 = sshll.u32 %s1068_s12, 4  ;;  %p997_p0 = scmp.ne.s32.totalorder %s1183_s0, %s996_s16  ;;  %s18_s13 = int_to_ptr.vmem [resolvable:$true] %s17_s13 }
   0x4   :  { %p1000_p1 = scmp.lt.u32.totalorder %s996_s16, %s1183_s0 }
   0x6   :  { %p1002_p2 = pnand %p1000_p1, %p997_p0 }
   0x8   :  { %1005 = shalt.err (!%p1002_p2)
}
   0x9   :  { %s1006_s21 = scalar_lea.vmem %s18_s13, 256  ;;  %p1011_p4 = scmp.lt.s32.totalorder %s18_s13, %s18_s13 }
   0xa   :  { %p1007_p3 = scmp.ne.s32.totalorder %s18_s13, %s1006_s21  ;;  %p1012_p5 = scmp.lt.s32.totalorder %s1006_s21, %s1006_s21 }
   0xc   :  { %p1013_p6 = por %p1012_p5, %p1011_p4 }
   0xe   :  { %p1014_p7 = pnand %p1013_p6, %p1007_p3 }
  0x10   :  { %1017 = shalt.err (!%p1014_p7)
}
  0x11   :  { %s1069_s22 = smov 128   ;;  %s1070_s23 = smov 8  }
  0x12   :  { %23 = dma.hbm_to_vmem [thread:$0]  %s1183_s0, 256, %s18_s13, [#allocation4], %s1069_s22, %s1069_s22, %s1070_s23  }
  0x13   :  { %s1071_s26 = smov [#allocation6]   ;;  %s1018_s30 = scalar_lea.hbm %s1184_s1, 7040 }
  0x14   :  { %s29_s27 = sshll.u32 %s1071_s26, 4  ;;  %p1019_p8 = scmp.ne.s32.totalorder %s1184_s1, %s1018_s30  ;;  %s30_s27 = int_to_ptr.vmem [resolvable:$true] %s29_s27 }
  0x15   :  { %p1022_p9 = scmp.lt.u32.totalorder %s1018_s30, %s1184_s1 }
  0x17   :  { %p1024_p10 = pnand %p1022_p9, %p1019_p8 }
  0x19   :  { %1027 = shalt.err (!%p1024_p10)
}
  0x1a   :  { %s1028_s8 = scalar_lea.vmem %s30_s27, 7040  ;;  %p1033_p12 = scmp.lt.s32.totalorder %s30_s27, %s30_s27 }
  0x1b   :  { %p1029_p11 = scmp.ne.s32.totalorder %s30_s27, %s1028_s8  ;;  %p1034_p13 = scmp.lt.s32.totalorder %s1028_s8, %s1028_s8 }
  0x1d   :  { %p1035_p0 = por %p1034_p13, %p1033_p12 }
  0x1f   :  { %p1036_p1 = pnand %p1035_p0, %p1029_p11 }
  0x21   :  { %1039 = shalt.err (!%p1036_p1)
}
  0x22   :  { %35 = dma.hbm_to_vmem [thread:$0]  %s1184_s1, 7040, %s30_s27, [#allocation7], %s1069_s22, %s1069_s22, %s1070_s23  }
  0x23   :  { %1062 = dma.done.wait [#allocation4], 256  }
  0x24   :  { %1063 = vsyncadd [#allocation4], 4294967040 }
  0x25   :  { %1064 = dma.done.wait [#allocation7], 7040  }
  0x26   :  { %1065 = vsyncadd [#allocation7], 4294960256  ;;  %v48_v0 = vlaneseq  ;;  %v1072_v1 = vmov 0.0   ;;  %v1128_v4 = vld [vmem:[#allocation3] sm:$0xff]  ;;  %v1130_v5 = vld [vmem:[#allocation3 + $0x8] sm:$0xff]  ;;  %vm56_vm0 = vcmask 130048  }
  0x27   :  { %124 = vmatprep.mubr.f32.mxu0 %v1072_v1  ;;  %v1073_v13 = vmov 1.0   ;;  %v154_v14 = vld [vmem:[#allocation6 + $0x10] sm:$0xff]  ;;  %v155_v15 = vld [vmem:[#allocation6 + $0x18] sm:$0xff]  ;;  %v156_v17 = vld [vmem:[#allocation6 + $0x20] sm:$0xff]  ;;  %s1074_s11 = smov [#allocation8]  }
  0x28   :  { %v49_v2 = vshrl.u32 %v48_v0, 7  ;;  %v863_v16 = vpack.c.bf16 %v155_v15, %v154_v14  ;;  %v157_v18 = vld [vmem:[#allocation6 + $0x28] sm:$0xff]  ;;  %v158_v20 = vld [vmem:[#allocation6 + $0x30] sm:$0xff]  ;;  %v159_v21 = vld [vmem:[#allocation6 + $0x38] sm:$0xff]  ;;  %s679_s12 = sshll.u32 %s1074_s11, 4  ;;  %s680_s12 = int_to_ptr.vmem [resolvable:$true] %s679_s12 }
  0x29   :  { %v867_v19 = vpack.c.bf16 %v157_v18, %v156_v17  ;;  %v871_v22 = vpack.c.bf16 %v159_v21, %v158_v20  ;;  %v160_v23 = vld [vmem:[#allocation6 + $0x40] sm:$0xff]  ;;  %v161_v24 = vld [vmem:[#allocation6 + $0x48] sm:$0xff]  ;;  %v162_v26 = vld [vmem:[#allocation6 + $0x50] sm:$0xff]  ;;  %s1040_s13 = scalar_lea.vmem %s680_s12, 256  ;;  %p1045_p3 = scmp.lt.s32.totalorder %s680_s12, %s680_s12 }
  0x2a   :  { %v1126_v3 = vsub.s32 0, %v49_v2  ;;  %864 = vmatprep.subr.bf16.mxu1 %v863_v16  ;;  %v875_v25 = vpack.c.bf16 %v161_v24, %v160_v23  ;;  %v163_v27 = vld [vmem:[#allocation6 + $0x58] sm:$0xff]  ;;  %v164_v29 = vld [vmem:[#allocation6 + $0x60] sm:$0xff]  ;;  %v165_v30 = vld [vmem:[#allocation6 + $0x68] sm:$0xff]  ;;  %p1041_p2 = scmp.ne.s32.totalorder %s680_s12, %s1040_s13  ;;  %p1046_p4 = scmp.lt.s32.totalorder %s1040_s13, %s1040_s13 }
  0x2b   :  { %866 = vmatpush3.bf16.msra.mxu1 %v863_v16  ;;  %v879_v28 = vpack.c.bf16 %v163_v27, %v162_v26  ;;  %v883_v31 = vpack.c.bf16 %v165_v30, %v164_v29  ;;  %v166_v32 = vld [vmem:[#allocation6 + $0x70] sm:$0xff]  ;;  %v167_v33 = vld [vmem:[#allocation6 + $0x78] sm:$0xff]  ;;  %v168_v35 = vld [vmem:[#allocation6 + $0x80] sm:$0xff] }
  0x2c   :  { %v51_v6 = vrot.slane %v1128_v4, %v1126_v3  ;;  %868 = vmatprep.subr.bf16.mxu1 %v867_v19  ;;  %v887_v34 = vpack.c.bf16 %v167_v33, %v166_v32  ;;  %v169_v36 = vld [vmem:[#allocation6 + $0x88] sm:$0xff]  ;;  %v46_v46 = vld [vmem:[#allocation6] sm:$0x1]  ;;  %v367_v16 = vld [vmem:[#allocation6 + $0xd0] sm:$0xff]  ;;  %p1047_p5 = por %p1046_p4, %p1045_p3 }
  0x2d   :  { %v891_v37 = vpack.c.bf16 %v169_v36, %v168_v35  ;;  %v47_v50 = vld [vmem:[#allocation6 + $0x8] sm:$0x1]  ;;  %v368_v17 = vld [vmem:[#allocation6 + $0xd8] sm:$0xff]  ;;  %v375_v27 = vld [vmem:[#allocation6 + $0x110] sm:$0xff] }
  0x2e   :  { %v52_v7 = vsub.f32 %v1128_v4, %v51_v6  ;;  %v53_v8 = vsub.f32 %v1130_v5, %v51_v6  ;;  %v366_v14 = vld [vmem:[#allocation6 + $0xc8] sm:$0xff]  ;;  %v911_v18 = vpack.c.bf16 %v368_v17, %v367_v16  ;;  %v372_v23 = vld [vmem:[#allocation6 + $0xf8] sm:$0xff]  ;;  %v470_v32 = vld [vmem:[#allocation6 + $0x130] sm:$0xff]  ;;  %p1048_p6 = pnand %p1047_p5, %p1041_p2 }
  0x2f   :  { %870 = vmatpush3.bf16.msra.mxu1 %v867_v19  ;;  %v369_v19 = vld [vmem:[#allocation6 + $0xe0] sm:$0xff]  ;;  %v370_v20 = vld [vmem:[#allocation6 + $0xe8] sm:$0xff]  ;;  %v376_v29 = vld [vmem:[#allocation6 + $0x118] sm:$0xff] }
  0x30   :  { %v54_v9 = vmul.f32 %v52_v7, %v52_v7  ;;  %v55_v10 = vmul.f32 %v53_v8, %v53_v8  ;;  %v861_v11 = vpack.c.bf16 %v53_v8, %v52_v7  ;;  %872 = vmatprep.subr.bf16.mxu1 %v871_v22  ;;  %v362_v7 = vld [vmem:[#allocation6 + $0xa8] sm:$0xff]  ;;  %v915_v21 = vpack.c.bf16 %v370_v20, %v369_v19  ;;  %v482_v17 = vld [vmem:[#allocation6 + $0x190] sm:$0xff]  ;;  %v484_v20 = vld [vmem:[#allocation6 + $0x1a0] sm:$0xff] }
  0x31   :  { %v374_v26 = vld [vmem:[#allocation6 + $0x108] sm:$0xff]  ;;  %v927_v30 = vpack.c.bf16 %v376_v29, %v375_v27 }
  0x32   :  { %v859_v12 = vpack.c.bf16 %v55_v10, %v54_v9  ;;  %v363_v9 = vld [vmem:[#allocation6 + $0xb0] sm:$0xff]  ;;  %v364_v10 = vld [vmem:[#allocation6 + $0xb8] sm:$0xff]  ;;  %v481_v16 = vld [vmem:[#allocation6 + $0x188] sm:$0xff] }
  0x33   :  { %874 = vmatpush3.bf16.msra.mxu1 %v871_v22  ;;  %v371_v22 = vld [vmem:[#allocation6 + $0xf0] sm:$0xff]  ;;  %v955_v19 = vpack.c.bf16 %v482_v17, %v481_v16 }
  0x34   :  { %860 = vmatprep.subr.bf16.mxu0 %v859_v12  ;;  %876 = vmatprep.subr.bf16.mxu1 %v875_v25  ;;  %v365_v12 = vld [vmem:[#allocation6 + $0xc0] sm:$0xff]  ;;  %v919_v24 = vpack.c.bf16 %v372_v23, %v371_v22 }
  0x35   :  { %862 = vmatpush1.bf16.msra.mxu0 %v861_v11  ;;  %v903_v11 = vpack.c.bf16 %v364_v10, %v363_v9  ;;  %v907_v15 = vpack.c.bf16 %v366_v14, %v365_v12  ;;  %v477_v10 = vld [vmem:[#allocation6 + $0x168] sm:$0xff]  ;;  %v480_v14 = vld [vmem:[#allocation6 + $0x180] sm:$0xff] }
  0x36   :  { %v696_v22 = vld [vmem:[#allocation6 + $0x120] ss:$0 sm:$0xff] }
  0x37   :  { %878 = vmatpush3.bf16.msra.mxu1 %v875_v25  ;;  %v373_v25 = vld [vmem:[#allocation6 + $0x100] sm:$0xff] }
  0x38   :  { %692 = vmatmul.mubr.msk.f32.vlgmr.msra.gmra.mrb[0].mxu0 %vm56_vm0, %v1073_v13  ;;  %880 = vmatprep.subr.bf16.mxu1 %v879_v28 }
  0x39   :  { %319 = vmatprep.mubr.f32.mxu0 %v1072_v1 }
  0x3b   :  { %882 = vmatpush3.bf16.msra.mxu1 %v879_v28  ;;  %v923_v28 = vpack.c.bf16 %v374_v26, %v373_v25 }
  0x3c   :  { %884 = vmatprep.subr.bf16.mxu1 %v883_v31 }
  0x3f   :  { %886 = vmatpush3.bf16.msra.mxu1 %v883_v31  ;;  %v469_v31 = vld [vmem:[#allocation6 + $0x128] sm:$0xff] }
  0x40   :  { %888 = vmatprep.subr.bf16.mxu1 %v887_v34  ;;  %v931_v33 = vpack.c.bf16 %v470_v32, %v469_v31 }
  0x43   :  { %890 = vmatpush3.bf16.msra.mxu1 %v887_v34 }
  0x44   :  { %892 = vmatprep.subr.bf16.mxu1 %v891_v37 }
  0x47   :  { %894 = vmatpush3.bf16.msra.mxu1 %v891_v37 }
  0x48   :  { %932 = vmatprep.subr.bf16.mxu1 %v931_v33 }
 0x10b   :  { %v126_v38 = vpop.f32.mrb[0].mxu0 }
 0x10c   :  { %v131_v39 = vmul.f32 0.0625, %v126_v38  ;;  %v128_v40 = vpop.f32.mrb[1].mxu0 }
 0x10d   :  { %v132_v41 = vmul.f32 0.0625, %v128_v40 }
 0x10e   :  { %v133_v42 = vmul.f32 %v131_v39, %v131_v39  ;;  %v139_v48 = vadd.f32 %v131_v39, %v1128_v4 }
 0x110   :  { %v134_v43 = vsub.f32 %v132_v41, %v133_v42 }
 0x112   :  { %v135_v44 = vmax.f32 %v134_v43, 0.0  ;;  %v245_v43 = vld [vmem:[#allocation6 + $0x90] sm:$0x1] }
 0x114   :  { %v136_v45 = vadd.f32 1e-05, %v135_v44 }
 0x116   :  { %974 = vrsqrt.f32 %v136_v45 }
 0x120   :  { %v975_v47 = vpop.eup %974 }
 0x121   :  { %v138_v49 = vmul.f32 %v975_v47, %v46_v46  ;;  %v246_v46 = vld [vmem:[#allocation6 + $0x98] sm:$0x1] }
 0x123   :  { %v140_v51 = vmul.f32 %v139_v48, %v138_v49  ;;  %v145_v52 = vrot.slane %v138_v49, %v1126_v3 }
 0x125   :  { %v141_v53 = vsub.f32 %v47_v50, %v140_v51  ;;  %v146_v54 = vmul.f32 %v145_v52, %v1128_v4  ;;  %v147_v56 = vmul.f32 %v145_v52, %v1130_v5  ;;  %v361_v5 = vld [vmem:[#allocation6 + $0xa0] sm:$0xff] }
 0x126   :  { %v899_v8 = vpack.c.bf16 %v362_v7, %v361_v5  ;;  %v475_v7 = vld [vmem:[#allocation6 + $0x158] sm:$0xff] }
 0x127   :  { %v151_v55 = vrot.slane %v141_v53, %v1126_v3 }
 0x129   :  { %v152_v57 = vadd.f32 %v151_v55, %v146_v54  ;;  %v153_v58 = vadd.f32 %v151_v55, %v147_v56 }
 0x12b   :  { %786 = vmatprep.mubr.f32.mxu1 %v152_v57 }
 0x12c   :  { %787 = vmatmul.mubr.f32.vlgmr.msra.gmra.mrb[0].mxu1 %v153_v58 }
 0x12d   :  { %934 = vmatpush3.bf16.msra.mxu1 %v931_v33 }
 0x1ff   :  { %v1144_v59 = vpop.f32.mrb[0].mxu1 }
 0x200   :  { %v1146_v60 = vpop.f32.mrb[1].mxu1 }
 0x201   :  { %v250_v61 = vrot.slane %v1146_v60, %v1126_v3 }
 0x203   :  { %v251_v62 = vsub.f32 %v1146_v60, %v250_v61  ;;  %v252_v63 = vsub.f32 %v1144_v59, %v250_v61 }
 0x205   :  { %v253_v0 = vmul.f32 %v251_v62, %v251_v62  ;;  %v254_v2 = vmul.f32 %v252_v63, %v252_v63  ;;  %v897_v4 = vpack.c.bf16 %v252_v63, %v251_v62 }
 0x207   :  { %v895_v6 = vpack.c.bf16 %v254_v2, %v253_v0 }
 0x209   :  { %896 = vmatprep.subr.bf16.mxu0 %v895_v6  ;;  %v474_v6 = vld [vmem:[#allocation6 + $0x150] sm:$0xff] }
 0x20a   :  { %898 = vmatpush1.bf16.msra.mxu0 %v897_v4  ;;  %v473_v4 = vld [vmem:[#allocation6 + $0x148] sm:$0xff] }
 0x20b   :  { %900 = vmatprep.subr.bf16.mxu0 %v899_v8  ;;  %v939_v5 = vpack.c.bf16 %v474_v6, %v473_v4 }
 0x20d   :  { %693 = vmatmul.mubr.msk.f32.vlgmr.msra.gmra.mrb[2].mxu0 %vm56_vm0, %v1073_v13 }
 0x20e   :  { %902 = vmatpush3.bf16.msra.mxu0 %v899_v8  ;;  %v476_v8 = vld [vmem:[#allocation6 + $0x160] sm:$0xff] }
 0x20f   :  { %904 = vmatprep.subr.bf16.mxu0 %v903_v11  ;;  %v943_v9 = vpack.c.bf16 %v476_v8, %v475_v7 }
 0x212   :  { %906 = vmatpush3.bf16.msra.mxu0 %v903_v11  ;;  %v478_v11 = vld [vmem:[#allocation6 + $0x170] sm:$0xff] }
 0x213   :  { %908 = vmatprep.subr.bf16.mxu0 %v907_v15  ;;  %v947_v12 = vpack.c.bf16 %v478_v11, %v477_v10 }
 0x216   :  { %910 = vmatpush3.bf16.msra.mxu0 %v907_v15 }
 0x217   :  { %912 = vmatprep.subr.bf16.mxu0 %v911_v18 }
 0x21a   :  { %914 = vmatpush3.bf16.msra.mxu0 %v911_v18  ;;  %v483_v18 = vld [vmem:[#allocation6 + $0x198] sm:$0xff] }
 0x21b   :  { %916 = vmatprep.subr.bf16.mxu0 %v915_v21 }
 0x21e   :  { %918 = vmatpush3.bf16.msra.mxu0 %v915_v21  ;;  %v959_v21 = vpack.c.bf16 %v484_v20, %v483_v18 }
 0x21f   :  { %920 = vmatprep.subr.bf16.mxu0 %v919_v24 }
 0x222   :  { %922 = vmatpush3.bf16.msra.mxu0 %v919_v24 }
 0x223   :  { %924 = vmatprep.subr.bf16.mxu0 %v923_v28 }
 0x226   :  { %926 = vmatpush3.bf16.msra.mxu0 %v923_v28 }
 0x227   :  { %928 = vmatprep.subr.bf16.mxu0 %v927_v30 }
 0x22a   :  { %930 = vmatpush3.bf16.msra.mxu0 %v927_v30 }
 0x2e0   :  { %v321_v34 = vpop.f32.mrb[2].mxu0 }
 0x2e1   :  { %v326_v35 = vmul.f32 0.0625, %v321_v34  ;;  %v323_v36 = vpop.f32.mrb[3].mxu0 }
 0x2e2   :  { %v327_v37 = vmul.f32 0.0625, %v323_v36 }
 0x2e3   :  { %v328_v38 = vmul.f32 %v326_v35, %v326_v35  ;;  %v334_v39 = vadd.f32 %v326_v35, %v1146_v60 }
 0x2e5   :  { %v329_v40 = vsub.f32 %v327_v37, %v328_v38 }
 0x2e7   :  { %v330_v41 = vmax.f32 %v329_v40, 0.0 }
 0x2e9   :  { %v331_v42 = vadd.f32 1e-05, %v330_v41 }
 0x2eb   :  { %976 = vrsqrt.f32 %v331_v42 }
 0x2f5   :  { %v977_v44 = vpop.eup %976 }
 0x2f6   :  { %v333_v45 = vmul.f32 %v977_v44, %v245_v43 }
 0x2f8   :  { %v335_v47 = vmul.f32 %v334_v39, %v333_v45  ;;  %v340_v48 = vrot.slane %v333_v45, %v1126_v3 }
 0x2fa   :  { %v336_v49 = vsub.f32 %v246_v46, %v335_v47  ;;  %v341_v50 = vmul.f32 %v340_v48, %v1146_v60  ;;  %v342_v51 = vmul.f32 %v1144_v59, %v340_v48  ;;  %v471_v59 = vld [vmem:[#allocation6 + $0x138] sm:$0xff]  ;;  %v472_v60 = vld [vmem:[#allocation6 + $0x140] sm:$0xff] }
 0x2fb   :  { %v935_v2 = vpack.c.bf16 %v472_v60, %v471_v59 }
 0x2fc   :  { %v346_v52 = vrot.slane %v336_v49, %v1126_v3 }
 0x2fd   :  { %936 = vmatprep.subr.bf16.mxu1 %v935_v2 }
 0x2fe   :  { %v347_v53 = vadd.f32 %v346_v52, %v341_v50  ;;  %v348_v54 = vadd.f32 %v346_v52, %v342_v51  ;;  %938 = vmatpush3.bf16.msra.mxu1 %v935_v2 }
 0x2ff   :  { %940 = vmatprep.subr.bf16.mxu1 %v939_v5 }
 0x300   :  { %v694_v55 = vmul.f32 -1.442695, %v347_v53  ;;  %v695_v56 = vmul.f32 -1.442695, %v348_v54  ;;  %v560_v53 = vld [vmem:[#allocation6 + $0x1a8] sm:$0x1] }
 0x302   :  { %978 = vpow2.f32 %v694_v55  ;;  %942 = vmatpush3.bf16.msra.mxu1 %v939_v5 }
 0x303   :  { %980 = vpow2.f32 %v695_v56  ;;  %944 = vmatprep.subr.bf16.mxu1 %v943_v9  ;;  %v561_v56 = vld [vmem:[#allocation6 + $0x1b0] sm:$0x1] }
 0x306   :  { %946 = vmatpush3.bf16.msra.mxu1 %v943_v9 }
 0x307   :  { %948 = vmatprep.subr.bf16.mxu1 %v947_v12 }
 0x30a   :  { %950 = vmatpush3.bf16.msra.mxu1 %v947_v12 }
 0x30c   :  { %v979_v57 = vpop.eup %978 }
 0x30d   :  { %v981_v58 = vpop.eup %980  ;;  %v355_v61 = vadd.f32 1.0, %v979_v57 }
 0x30e   :  { %v356_v62 = vadd.f32 1.0, %v981_v58 }
 0x30f   :  { %982 = vrcp.f32 %v355_v61 }
 0x310   :  { %984 = vrcp.f32 %v356_v62 }
 0x319   :  { %v983_v63 = vpop.eup %982 }
 0x31a   :  { %v985_v0 = vpop.eup %984  ;;  %821 = vmatprep.mubr.f32.mxu0 %v983_v63 }
 0x31b   :  { %822 = vmatmul.mubr.f32.vlgmr.msra.gmra.mrb[4].mxu0 %v985_v0  ;;  %v667_v0 = vstv %s1185_s2 }
 0x31c   :  { %634 = vmatprep.mubr.f32.mxu0 %v1072_v1  ;;  %v479_v1 = vld [vmem:[#allocation6 + $0x178] sm:$0xff] }
 0x31d   :  { %v951_v15 = vpack.c.bf16 %v480_v14, %v479_v1 }
 0x31f   :  { %952 = vmatprep.subr.bf16.mxu1 %v951_v15 }
 0x320   :  { %954 = vmatpush3.bf16.msra.mxu1 %v951_v15 }
 0x321   :  { %956 = vmatprep.subr.bf16.mxu1 %v955_v19 }
 0x324   :  { %958 = vmatpush3.bf16.msra.mxu1 %v955_v19 }
 0x325   :  { %960 = vmatprep.subr.bf16.mxu1 %v959_v21 }
 0x328   :  { %962 = vmatpush3.bf16.msra.mxu1 %v959_v21 }
 0x3ee   :  { %v823_v23 = vpop.f32.mrb[4].mxu0 }
 0x3ef   :  { %v454_v24 = vadd.f32 %v823_v23, %v696_v22  ;;  %v448_v25 = vpop.f32.mrb[5].mxu0 }
 0x3f0   :  { %v449_v26 = vadd.f32 %v696_v22, %v448_v25 }
 0x3f1   :  { %v698_v27 = vmul.f32 -1.442695, %v454_v24 }
 0x3f2   :  { %v697_v28 = vmul.f32 -1.442695, %v449_v26 }
 0x3f3   :  { %986 = vpow2.f32 %v698_v27 }
 0x3f4   :  { %988 = vpow2.f32 %v697_v28 }
 0x3fd   :  { %v987_v29 = vpop.eup %986 }
 0x3fe   :  { %v989_v30 = vpop.eup %988  ;;  %v464_v31 = vadd.f32 1.0, %v987_v29 }
 0x3ff   :  { %v463_v32 = vadd.f32 1.0, %v989_v30 }
 0x401   :  { %990 = vrcp.f32 %v463_v32 }
 0x402   :  { %992 = vrcp.f32 %v464_v31 }
 0x40b   :  { %v991_v33 = vpop.eup %990 }
 0x40c   :  { %v993_v34 = vpop.eup %992  ;;  %856 = vmatprep.mubr.f32.mxu1 %v991_v33 }
 0x40d   :  { %857 = vmatmul.mubr.f32.vlgmr.msra.gmra.mrb[2].mxu1 %v993_v34 }
 0x4e0   :  { %v858_v35 = vpop.f32.mrb[2].mxu1 }
 0x4e1   :  { %v551_v36 = vpop.f32.mrb[3].mxu1 }
 0x4e2   :  { %v565_v37 = vrot.slane %v551_v36, %v1126_v3 }
 0x4e4   :  { %v566_v38 = vsub.f32 %v551_v36, %v565_v37  ;;  %v567_v39 = vsub.f32 %v858_v35, %v565_v37 }
 0x4e6   :  { %v568_v40 = vmul.f32 %v566_v38, %v566_v38  ;;  %v965_v41 = vpack.c.bf16 %v567_v39, %v566_v38  ;;  %v569_v42 = vmul.f32 %v567_v39, %v567_v39 }
 0x4e8   :  { %v963_v43 = vpack.c.bf16 %v569_v42, %v568_v40 }
 0x4ea   :  { %964 = vmatprep.subr.bf16.mxu0 %v963_v43 }
 0x4eb   :  { %966 = vmatpush1.bf16.msra.mxu0 %v965_v41 }
 0x4ee   :  { %699 = vmatmul.mubr.msk.f32.vlgmr.msra.gmra.mrb[6].mxu0 %vm56_vm0, %v1073_v13 }
 0x5c1   :  { %v636_v44 = vpop.f32.mrb[6].mxu0 }
 0x5c2   :  { %v641_v45 = vmul.f32 0.0625, %v636_v44  ;;  %v638_v46 = vpop.f32.mrb[7].mxu0 }
 0x5c3   :  { %v642_v47 = vmul.f32 0.0625, %v638_v46 }
 0x5c4   :  { %v643_v48 = vmul.f32 %v641_v45, %v641_v45  ;;  %v649_v49 = vadd.f32 %v641_v45, %v551_v36 }
 0x5c6   :  { %v644_v50 = vsub.f32 %v642_v47, %v643_v48 }
 0x5c8   :  { %v645_v51 = vmax.f32 %v644_v50, 0.0 }
 0x5ca   :  { %v646_v52 = vadd.f32 1e-05, %v645_v51 }
 0x5cc   :  { %994 = vrsqrt.f32 %v646_v52 }
 0x5d6   :  { %v995_v54 = vpop.eup %994 }
 0x5d7   :  { %v648_v55 = vmul.f32 %v995_v54, %v560_v53 }
 0x5d9   :  { %v650_v57 = vmul.f32 %v649_v49, %v648_v55  ;;  %v655_v58 = vrot.slane %v648_v55, %v1126_v3 }
 0x5db   :  { %v651_v61 = vsub.f32 %v561_v56, %v650_v57  ;;  %v656_v62 = vmul.f32 %v655_v58, %v551_v36  ;;  %v657_v13 = vmul.f32 %v858_v35, %v655_v58 }
 0x5dd   :  { %v661_v63 = vrot.slane %v651_v61, %v1126_v3 }
 0x5df   :  { %v662_v59 = vadd.f32 %v661_v63, %v656_v62  ;;  %v663_v60 = vadd.f32 %v661_v63, %v657_v13 }
 0x5e1   :  { %vm665_vm1 = vcmp.ge.f32.partialorder %v662_v59, 0.0  ;;  %vm666_vm2 = vcmp.ge.f32.partialorder %v663_v60, 0.0  ;;  %v668_v2 = vmul.f32 %v667_v0, %v662_v59  ;;  %v669_v4 = vmul.f32 %v667_v0, %v663_v60 }
 0x5e3   :  { %v670_v6 = vsel %vm665_vm1, %v662_v59, %v668_v2  ;;  %v671_v5 = vsel %vm666_vm2, %v663_v60, %v669_v4 }
 0x5e4   :  { %672 = vst [vmem:[#allocation8] sm:$0xff] %v670_v6  ;;  %673 = vst [vmem:[#allocation8 + $0x8] sm:$0xff] %v671_v5 }
 0x5e5   :  { %1051 = shalt.err (!%p1048_p6)
}
 0x5e6   :  { %s1052_s15 = scalar_lea.hbm %s1186_s3, 256 }
 0x5e7   :  { %p1053_p7 = scmp.ne.s32.totalorder %s1186_s3, %s1052_s15  ;;  %p1056_p8 = scmp.lt.u32.totalorder %s1052_s15, %s1186_s3 }
 0x5e9   :  { %p1058_p9 = pnand %p1056_p8, %p1053_p7 }
 0x5eb   :  { %1061 = shalt.err (!%p1058_p9)
}
 0x5ec   :  { %685 = dma.vmem_to_hbm [thread:$0]  %s680_s12, 256, %s1186_s3, [#allocation5], %s1069_s22, %s1069_s22, %s1070_s23  }
 0x5ed   :  { %1066 = dma.done.wait [#allocation5], 256  }
 0x5ee   :  { %1067 = vsyncadd [#allocation5], 4294967040 }
 0x5ef   :  { %689 = vsyncpa [#allocation4], 1 }
 0x5f0   :  { %690 = vsyncpa [#allocation7], 1 }
 0x5f1   :  { %691 = vsyncpa [#allocation5], 1 }

</bundles_post_ra>
